<compile_context>
chip_gen: v6e
topology: v6e:2x2x1
jax: 0.10.0
libtpu: 0.0.40
codegen_flags: <defaults>
</compile_context>

<pallas_src>
import jax
import jax.numpy as jnp
import numpy as np
from jax.experimental import pallas as pl
from jax.experimental.pallas import tpu as pltpu


def _round_up(x, m):
    return ((x + m - 1) // m) * m


def _cdiv(a, b):
    return -(-a // b)


def actor_critic_kernel(
    const_ref,            # SMEM (1,)      : -0.5 * (log|Sigma| + A*log(2*pi))
    state_ref,            # VMEM (tb, S)
    action_ref,           # VMEM (tb, A)
    inv_var_ref,          # VMEM (1, A)    : 1 / action_var
    w1_ref, b1_ref,       # (S, 2H)  / (1, 2H)    fused actor|critic layer 1
    w2_ref, b2_ref,       # (2H, 2H) / (1, 2H)    block-diagonal layer 2
    w3_ref, b3_ref,       # (2H, ZW) / (1, ZW)    block-diag layer 3, padded to 128 lanes
    out_ref,              # VMEM (2, tb)   row 0 = logp, row 1 = value  (lane-dense)
):
    x = state_ref[...]                                                  # [tb, S] f32

    h = jnp.dot(x, w1_ref[...], preferred_element_type=jnp.float32)
    h = jnp.tanh(h + b1_ref[...])                                       # [tb, 2H]

    h = jnp.dot(h, w2_ref[...], preferred_element_type=jnp.float32)
    h = jnp.tanh(h + b2_ref[...])                                       # [tb, 2H]

    z = jnp.dot(h, w3_ref[...], preferred_element_type=jnp.float32)
    z = z + b3_ref[...]                                                 # [tb, ZW]

    a_dim = action_ref.shape[-1]
    action_mean = jnp.tanh(z[:, :a_dim])          # actor head (final Tanh), [tb, A]
    diff = action_ref[...] - action_mean
    dsq = diff * diff                                                   # [tb, A]

    # Gaussian quadratic form, produced directly as a lane-dense [1, tb] row on the
    # MXU:  quad[0, b] = sum_a inv_var[a] * dsq[b, a]   (A @ B^T contraction).
    quad = jax.lax.dot_general(
        inv_var_ref[...], dsq,
        dimension_numbers=(((1,), (1,)), ((), ())),
        precision=jax.lax.Precision.HIGHEST,
        preferred_element_type=jnp.float32)                             # [1, tb]
    logp_row = -0.5 * quad + const_ref[0]                               # [1, tb]

    # Critic value: select lane `a_dim` of z as a lane-dense [1, tb] row via a
    # one-hot A @ B^T contraction (the MXU has plenty of slack here).
    lane = jax.lax.broadcasted_iota(jnp.int32, (1, z.shape[-1]), 1)
    vsel = (lane == a_dim).astype(jnp.float32)                          # [1, ZW]
    val_row = jax.lax.dot_general(
        vsel, z,
        dimension_numbers=(((1,), (1,)), ((), ())),
        precision=jax.lax.Precision.HIGHEST,
        preferred_element_type=jnp.float32)                             # [1, tb]

    out_ref[0:1, :] = logp_row
    out_ref[1:2, :] = val_row


def make_params(key, state_dim, action_dim, hidden=64):
    """Deterministic PyTorch nn.Linear-style init; weights stored as [in, out]."""
    def linear(k, fan_in, fan_out):
        k1, k2 = jax.random.split(k)
        bound = 1.0 / np.sqrt(fan_in)
        w = jax.random.uniform(k1, (fan_in, fan_out), jnp.float32, -bound, bound)
        b = jax.random.uniform(k2, (1, fan_out), jnp.float32, -bound, bound)
        return w, b

    keys = jax.random.split(key, 6)
    aw1, ab1 = linear(keys[0], state_dim, hidden)
    aw2, ab2 = linear(keys[1], hidden, hidden)
    aw3, ab3 = linear(keys[2], hidden, action_dim)
    cw1, cb1 = linear(keys[3], state_dim, hidden)
    cw2, cb2 = linear(keys[4], hidden, hidden)
    cw3, cb3 = linear(keys[5], hidden, 1)
    return (aw1, ab1, aw2, ab2, aw3, ab3, cw1, cb1, cw2, cb2, cw3, cb3)


def pack_params(params):
    """Fuse actor/critic weights into 3 lane-wide f32 layers. Done ONCE, not per call.

    Layer 3 is padded to a full 128-lane head: actor mean in lanes [0, A), critic
    value in lane A, zeros elsewhere.
    """
    (aw1, ab1, aw2, ab2, aw3, ab3, cw1, cb1, cw2, cb2, cw3, cb3) = params
    hidden = aw1.shape[1]
    a_dim = aw3.shape[1]
    zw = _round_up(a_dim + 1, 128)                            # padded head width

    w1 = jnp.concatenate([aw1, cw1], axis=1)                  # [S, 2H]
    b1 = jnp.concatenate([ab1, cb1], axis=1)                  # [1, 2H]

    w2 = jnp.zeros((2 * hidden, 2 * hidden), jnp.float32)     # block-diagonal
    w2 = w2.at[:hidden, :hidden].set(aw2).at[hidden:, hidden:].set(cw2)
    b2 = jnp.concatenate([ab2, cb2], axis=1)                  # [1, 2H]

    w3 = jnp.zeros((2 * hidden, zw), jnp.float32)             # block-diag, lane-padded
    w3 = w3.at[:hidden, :a_dim].set(aw3)
    w3 = w3.at[hidden:, a_dim:a_dim + 1].set(cw3)
    b3 = jnp.zeros((1, zw), jnp.float32)
    b3 = b3.at[:, :a_dim].set(ab3)
    b3 = b3.at[:, a_dim:a_dim + 1].set(cb3)
    return (w1, b1, w2, b2, w3, b3)


def _choose_tiles(batch, block_b, num_cores):
    """Pick (tile_b, n_tiles). Prefer one exact-size tile; otherwise multiple-of-128
    tiles with an even count on v7x (num_cores=2)."""
    if batch <= block_b and num_cores <= 1:
        return batch, 1
    n = max(num_cores, _cdiv(batch, block_b))
    if num_cores > 1 and n % num_cores:
        n += num_cores - (n % num_cores)
    tile_b = _round_up(_cdiv(batch, n), 128)
    if tile_b >= batch:          # can't usefully split: one exact-size tile
        return batch, 1
    return tile_b, _cdiv(batch, tile_b)


def actor_critic_evaluate(state, action, action_var, packed, *,
                          block_b=4096, num_cores=1):
    """Pallas-backed ActorCritic.evaluate (continuous action space).

    Returns (action_logprobs [B], state_values [B, 1], dist_entropy [B]).
    Set num_cores=2 on v7x so the 'parallel' grid axis feeds both TensorCores.
    """
    B, s_dim = state.shape
    a_dim = action.shape[-1]
    (w1, b1, w2, b2, w3, b3) = packed
    h2 = w1.shape[1]
    zw = w3.shape[1]

    # ---- constant Gaussian terms, hoisted out of the kernel ----
    action_var = action_var.astype(jnp.float32)
    log2pi = float(np.log(2.0 * np.pi))
    logdet = jnp.sum(jnp.log(action_var))                              # log|Sigma|
    const = (-0.5 * (logdet + a_dim * log2pi)).reshape(1).astype(jnp.float32)
    inv_var = (1.0 / action_var).reshape(1, a_dim)
    entropy = jnp.full((B,), 0.5 * (logdet + a_dim * (1.0 + log2pi)), jnp.float32)

    # ---- batch tiling (no wrapper-side padding/copy of the batch) ----
    tile_b, n_tiles = _choose_tiles(B, block_b, num_cores)

    resident = lambda i: (0, 0)   # weights/biases/inv_var stay VMEM-resident

    flops = 2 * B * (s_dim * h2 + h2 * h2 + h2 * zw + zw + a_dim)
    transcendentals = B * (2 * h2 + a_dim)
    bytes_accessed = 4 * (B * (s_dim + a_dim + 2)
                          + s_dim * h2 + h2 * h2 + h2 * zw + 2 * h2 + zw + a_dim)

    out = pl.pallas_call(
        actor_critic_kernel,
        out_shape=jax.ShapeDtypeStruct((2, B), jnp.float32),
        grid=(n_tiles,),
        in_specs=[
            pl.BlockSpec(memory_space=pltpu.MemorySpace.SMEM),       # const scalar
            pl.BlockSpec((tile_b, s_dim), lambda i: (i, 0)),         # state
            pl.BlockSpec((tile_b, a_dim), lambda i: (i, 0)),         # action
            pl.BlockSpec(inv_var.shape, resident),                   # inv_var
            pl.BlockSpec(w1.shape, resident), pl.BlockSpec(b1.shape, resident),
            pl.BlockSpec(w2.shape, resident), pl.BlockSpec(b2.shape, resident),
            pl.BlockSpec(w3.shape, resident), pl.BlockSpec(b3.shape, resident),
        ],
        out_specs=pl.BlockSpec((2, tile_b), lambda i: (0, i)),       # lane-dense
        compiler_params=pltpu.CompilerParams(
            dimension_semantics=("parallel",),
        ),
        cost_estimate=pl.CostEstimate(
            flops=flops, transcendentals=transcendentals,
            bytes_accessed=bytes_accessed),
    )(const, state, action, inv_var, w1, b1, w2, b2, w3, b3)

    logp = out[0]
    value = out[1][:, None]
    return logp, value, entropy


def _reference_evaluate(state, action, action_var, params):
    (aw1, ab1, aw2, ab2, aw3, ab3, cw1, cb1, cw2, cb2, cw3, cb3) = params
    h = jnp.tanh(state @ aw1 + ab1)
    h = jnp.tanh(h @ aw2 + ab2)
    mean = jnp.tanh(h @ aw3 + ab3)
    g = jnp.tanh(state @ cw1 + cb1)
    g = jnp.tanh(g @ cw2 + cb2)
    v = g @ cw3 + cb3
    k = action.shape[-1]
    log2pi = np.log(2.0 * np.pi)
    logdet = jnp.sum(jnp.log(action_var))
    quad = jnp.sum((action - mean) ** 2 / action_var, axis=-1)
    logp = -0.5 * (quad + logdet + k * log2pi)
    ent = jnp.full((state.shape[0],), 0.5 * (logdet + k * (1.0 + log2pi)))
    return logp, v, ent


if __name__ == "__main__":
    B, STATE_DIM, ACTION_DIM = 8, 32, 4
    ACTION_STD_INIT = 0.6

    key = jax.random.PRNGKey(0)
    k_state, k_action, k_params = jax.random.split(key, 3)

    state = jax.random.normal(k_state, (B, STATE_DIM), jnp.float32)
    action = jax.random.normal(k_action, (B, ACTION_DIM), jnp.float32)
    action_var = jnp.full((ACTION_DIM,), ACTION_STD_INIT * ACTION_STD_INIT, jnp.float32)

    raw_params = make_params(k_params, STATE_DIM, ACTION_DIM)
    packed = pack_params(raw_params)

    # ---- small batch (B=8): single exact-size tile, must match the reference ----
    logp, values, entropy = actor_critic_evaluate(state, action, action_var, packed)
    jax.block_until_ready((logp, values, entropy))
    r_logp, r_v, r_ent = _reference_evaluate(state, action, action_var, raw_params)
    assert np.allclose(np.asarray(logp), np.asarray(r_logp), rtol=1e-4, atol=1e-3)
    assert np.allclose(np.asarray(values), np.asarray(r_v), rtol=1e-4, atol=1e-3)
    assert np.allclose(np.asarray(entropy), np.asarray(r_ent), atol=1e-4)

    # ---- realistic PPO batch: collapses to ONE grid step (no pad copy) ----
    B2 = 1000
    k1, k2 = jax.random.split(jax.random.PRNGKey(1))
    state2 = jax.random.normal(k1, (B2, STATE_DIM), jnp.float32)
    action2 = jax.random.normal(k2, (B2, ACTION_DIM), jnp.float32)
    logp2, values2, ent2 = actor_critic_evaluate(state2, action2, action_var, packed)
    jax.block_until_ready((logp2, values2, ent2))
    r_logp2, r_v2, r_ent2 = _reference_evaluate(state2, action2, action_var, raw_params)
    assert np.allclose(np.asarray(logp2), np.asarray(r_logp2), rtol=1e-4, atol=1e-3)
    assert np.allclose(np.asarray(values2), np.asarray(r_v2), rtol=1e-4, atol=1e-3)
    assert np.allclose(np.asarray(ent2), np.asarray(r_ent2), atol=1e-4)

    # ---- multi-tile path (even tile count as on v7x) + ragged last block ----
    logp3, values3, ent3 = actor_critic_evaluate(
        state2, action2, action_var, packed, block_b=256, num_cores=2)
    jax.block_until_ready((logp3, values3, ent3))
    assert np.allclose(np.asarray(logp3), np.asarray(r_logp2), rtol=1e-4, atol=1e-3)
    assert np.allclose(np.asarray(values3), np.asarray(r_v2), rtol=1e-4, atol=1e-3)

    print("KERNEL_OK")
</pallas_src>

<mosaic_0001>
module attributes {stable_mosaic.version = 11 : i64} {
  func.func @actor_critic_kernel(%arg0: i32, %arg1: memref<1xf32, #tpu.memory_space<smem>>, %arg2: memref<8x32xf32, #tpu.memory_space<vmem>>, %arg3: memref<8x4xf32, #tpu.memory_space<vmem>>, %arg4: memref<1x4xf32, #tpu.memory_space<vmem>>, %arg5: memref<32x128xf32, #tpu.memory_space<vmem>>, %arg6: memref<1x128xf32, #tpu.memory_space<vmem>>, %arg7: memref<128x128xf32, #tpu.memory_space<vmem>>, %arg8: memref<1x128xf32, #tpu.memory_space<vmem>>, %arg9: memref<128x128xf32, #tpu.memory_space<vmem>>, %arg10: memref<1x128xf32, #tpu.memory_space<vmem>>, %arg11: memref<2x8xf32, #tpu.memory_space<vmem>>) attributes {dimension_semantics = [#tpu.dimension_semantics<parallel>], iteration_bounds = array<i64: 1>, scalar_prefetch = 0 : i64, scratch_operands = 0 : i64, tpu.core_type = #tpu.core_type<tc>, window_params = [{transform_indices = @transform_0, window_bounds = array<i64: 1>}, {transform_indices = @transform_1, window_bounds = array<i64: 8, 32>}, {transform_indices = @transform_2, window_bounds = array<i64: 8, 4>}, {pipeline_mode = #tpu.pipeline_mode<synchronous>, transform_indices = @transform_3, window_bounds = array<i64: 1, 4>}, {pipeline_mode = #tpu.pipeline_mode<synchronous>, transform_indices = @transform_4, window_bounds = array<i64: 32, 128>}, {pipeline_mode = #tpu.pipeline_mode<synchronous>, transform_indices = @transform_5, window_bounds = array<i64: 1, 128>}, {pipeline_mode = #tpu.pipeline_mode<synchronous>, transform_indices = @transform_6, window_bounds = array<i64: 128, 128>}, {pipeline_mode = #tpu.pipeline_mode<synchronous>, transform_indices = @transform_7, window_bounds = array<i64: 1, 128>}, {pipeline_mode = #tpu.pipeline_mode<synchronous>, transform_indices = @transform_8, window_bounds = array<i64: 128, 128>}, {pipeline_mode = #tpu.pipeline_mode<synchronous>, transform_indices = @transform_9, window_bounds = array<i64: 1, 128>}, {transform_indices = @transform_10, window_bounds = array<i64: 2, 8>}]} {
    %c0 = arith.constant 0 : index
    %c0_0 = arith.constant 0 : index
    %0 = vector.load %arg2[%c0, %c0_0] : memref<8x32xf32, #tpu.memory_space<vmem>>, vector<8x32xf32>
    %c0_1 = arith.constant 0 : index
    %c0_2 = arith.constant 0 : index
    %1 = vector.load %arg5[%c0_1, %c0_2] : memref<32x128xf32, #tpu.memory_space<vmem>>, vector<32x128xf32>
    %cst = arith.constant dense<0.000000e+00> : vector<8x128xf32>
    %2 = tpu.matmul %0, %1, %cst {dimension_numbers = #tpu.dot_dimension_numbers<[1], [0], [0], [1], [0, 0, 1, 1], [], []>} : vector<8x32xf32>, vector<32x128xf32>, vector<8x128xf32> -> vector<8x128xf32>
    %c0_3 = arith.constant 0 : index
    %c0_4 = arith.constant 0 : index
    %3 = vector.load %arg6[%c0_3, %c0_4] : memref<1x128xf32, #tpu.memory_space<vmem>>, vector<1x128xf32>
    %4 = vector.broadcast %3 : vector<1x128xf32> to vector<8x128xf32>
    %5 = arith.addf %2, %4 : vector<8x128xf32>
    %6 = math.tanh %5 : vector<8x128xf32>
    %c0_5 = arith.constant 0 : index
    %c0_6 = arith.constant 0 : index
    %7 = vector.load %arg7[%c0_5, %c0_6] : memref<128x128xf32, #tpu.memory_space<vmem>>, vector<128x128xf32>
    %cst_7 = arith.constant dense<0.000000e+00> : vector<8x128xf32>
    %8 = tpu.matmul %6, %7, %cst_7 {dimension_numbers = #tpu.dot_dimension_numbers<[1], [0], [0], [1], [0, 0, 1, 1], [], []>} : vector<8x128xf32>, vector<128x128xf32>, vector<8x128xf32> -> vector<8x128xf32>
    %c0_8 = arith.constant 0 : index
    %c0_9 = arith.constant 0 : index
    %9 = vector.load %arg8[%c0_8, %c0_9] : memref<1x128xf32, #tpu.memory_space<vmem>>, vector<1x128xf32>
    %10 = vector.broadcast %9 : vector<1x128xf32> to vector<8x128xf32>
    %11 = arith.addf %8, %10 : vector<8x128xf32>
    %12 = math.tanh %11 : vector<8x128xf32>
    %c0_10 = arith.constant 0 : index
    %c0_11 = arith.constant 0 : index
    %13 = vector.load %arg9[%c0_10, %c0_11] : memref<128x128xf32, #tpu.memory_space<vmem>>, vector<128x128xf32>
    %cst_12 = arith.constant dense<0.000000e+00> : vector<8x128xf32>
    %14 = tpu.matmul %12, %13, %cst_12 {dimension_numbers = #tpu.dot_dimension_numbers<[1], [0], [0], [1], [0, 0, 1, 1], [], []>} : vector<8x128xf32>, vector<128x128xf32>, vector<8x128xf32> -> vector<8x128xf32>
    %c0_13 = arith.constant 0 : index
    %c0_14 = arith.constant 0 : index
    %15 = vector.load %arg10[%c0_13, %c0_14] : memref<1x128xf32, #tpu.memory_space<vmem>>, vector<1x128xf32>
    %16 = vector.broadcast %15 : vector<1x128xf32> to vector<8x128xf32>
    %17 = arith.addf %14, %16 : vector<8x128xf32>
    %18 = vector.extract_strided_slice %17 {offsets = [0, 0], sizes = [8, 4], strides = [1, 1]} : vector<8x128xf32> to vector<8x4xf32>
    %19 = math.tanh %18 : vector<8x4xf32>
    %c0_15 = arith.constant 0 : index
    %c0_16 = arith.constant 0 : index
    %20 = vector.load %arg3[%c0_15, %c0_16] : memref<8x4xf32, #tpu.memory_space<vmem>>, vector<8x4xf32>
    %21 = arith.subf %20, %19 : vector<8x4xf32>
    %22 = arith.mulf %21, %21 : vector<8x4xf32>
    %c0_17 = arith.constant 0 : index
    %c0_18 = arith.constant 0 : index
    %23 = vector.load %arg4[%c0_17, %c0_18] : memref<1x4xf32, #tpu.memory_space<vmem>>, vector<1x4xf32>
    %cst_19 = arith.constant dense<0.000000e+00> : vector<1x8xf32>
    %24 = tpu.matmul %23, %22, %cst_19 {dimension_numbers = #tpu.dot_dimension_numbers<[1], [1], [0], [0], [0, 0, 1, 0], [], []>, precision = #tpu.contract_precision<fp32>} : vector<1x4xf32>, vector<8x4xf32>, vector<1x8xf32> -> vector<1x8xf32>
    %cst_20 = arith.constant -5.000000e-01 : f32
    %25 = vector.broadcast %cst_20 : f32 to vector<1x8xf32>
    %26 = arith.mulf %25, %24 : vector<1x8xf32>
    %c0_21 = arith.constant 0 : index
    %27 = memref.load %arg1[%c0_21] : memref<1xf32, #tpu.memory_space<smem>>
    %28 = vector.broadcast %27 : f32 to vector<1x8xf32>
    %29 = arith.addf %26, %28 : vector<1x8xf32>
    %30 = tpu.iota {dimensions = array<i32: 1>} : vector<1x128xi32>
    %c4_i32 = arith.constant 4 : i32
    %31 = vector.broadcast %c4_i32 : i32 to vector<1x128xi32>
    %32 = arith.cmpi eq, %30, %31 : vector<1x128xi32>
    %33 = arith.extui %32 : vector<1x128xi1> to vector<1x128xi32>
    %34 = arith.sitofp %33 : vector<1x128xi32> to vector<1x128xf32>
    %cst_22 = arith.constant dense<0.000000e+00> : vector<1x8xf32>
    %35 = tpu.matmul %34, %17, %cst_22 {dimension_numbers = #tpu.dot_dimension_numbers<[1], [1], [0], [0], [0, 0, 1, 0], [], []>, precision = #tpu.contract_precision<fp32>} : vector<1x128xf32>, vector<8x128xf32>, vector<1x8xf32> -> vector<1x8xf32>
    %c0_23 = arith.constant 0 : index
    %c0_24 = arith.constant 0 : index
    %36 = vector.load %arg11[%c0_23, %c0_24] : memref<2x8xf32, #tpu.memory_space<vmem>>, vector<1x8xf32>
    tpu.vector_store %arg11[%c0_23, %c0_24], %29 {strides = array<i32>} : memref<2x8xf32, #tpu.memory_space<vmem>>, vector<1x8xf32>,
    %c1 = arith.constant 1 : index
    %c0_25 = arith.constant 0 : index
    %37 = vector.load %arg11[%c1, %c0_25] : memref<2x8xf32, #tpu.memory_space<vmem>>, vector<1x8xf32>
    tpu.vector_store %arg11[%c1, %c0_25], %35 {strides = array<i32>} : memref<2x8xf32, #tpu.memory_space<vmem>>, vector<1x8xf32>,
    return
  }
  func.func @transform_0(%arg0: i32) -> i32 {
    %c0_i32 = arith.constant 0 : i32
    %c0_i32_0 = arith.constant 0 : i32
    return %c0_i32 : i32
  }
  func.func @transform_1(%arg0: i32) -> (i32, i32) {
    %c0_i32 = arith.constant 0 : i32
    %c0_i32_0 = arith.constant 0 : i32
    return %arg0, %c0_i32 : i32, i32
  }
  func.func @transform_2(%arg0: i32) -> (i32, i32) {
    %c0_i32 = arith.constant 0 : i32
    %c0_i32_0 = arith.constant 0 : i32
    return %arg0, %c0_i32 : i32, i32
  }
  func.func @transform_3(%arg0: i32) -> (i32, i32) {
    %c0_i32 = arith.constant 0 : i32
    %c0_i32_0 = arith.constant 0 : i32
    %c0_i32_1 = arith.constant 0 : i32
    return %c0_i32, %c0_i32_0 : i32, i32
  }
  func.func @transform_4(%arg0: i32) -> (i32, i32) {
    %c0_i32 = arith.constant 0 : i32
    %c0_i32_0 = arith.constant 0 : i32
    %c0_i32_1 = arith.constant 0 : i32
    return %c0_i32, %c0_i32_0 : i32, i32
  }
  func.func @transform_5(%arg0: i32) -> (i32, i32) {
    %c0_i32 = arith.constant 0 : i32
    %c0_i32_0 = arith.constant 0 : i32
    %c0_i32_1 = arith.constant 0 : i32
    return %c0_i32, %c0_i32_0 : i32, i32
  }
  func.func @transform_6(%arg0: i32) -> (i32, i32) {
    %c0_i32 = arith.constant 0 : i32
    %c0_i32_0 = arith.constant 0 : i32
    %c0_i32_1 = arith.constant 0 : i32
    return %c0_i32, %c0_i32_0 : i32, i32
  }
  func.func @transform_7(%arg0: i32) -> (i32, i32) {
    %c0_i32 = arith.constant 0 : i32
    %c0_i32_0 = arith.constant 0 : i32
    %c0_i32_1 = arith.constant 0 : i32
    return %c0_i32, %c0_i32_0 : i32, i32
  }
  func.func @transform_8(%arg0: i32) -> (i32, i32) {
    %c0_i32 = arith.constant 0 : i32
    %c0_i32_0 = arith.constant 0 : i32
    %c0_i32_1 = arith.constant 0 : i32
    return %c0_i32, %c0_i32_0 : i32, i32
  }
  func.func @transform_9(%arg0: i32) -> (i32, i32) {
    %c0_i32 = arith.constant 0 : i32
    %c0_i32_0 = arith.constant 0 : i32
    %c0_i32_1 = arith.constant 0 : i32
    return %c0_i32, %c0_i32_0 : i32, i32
  }
  func.func @transform_10(%arg0: i32) -> (i32, i32) {
    %c0_i32 = arith.constant 0 : i32
    %c0_i32_0 = arith.constant 0 : i32
    return %c0_i32, %arg0 : i32, i32
  }
}

</mosaic_0001>

<bundles_post_ra>
// kernel: tpu_custom_call.1
= control target key start
LH: loop header
LB: loop body
LE: loop exit
PB: predicated region body
PF: predicated region fallthrough
CT: control target
= control target key end

     0   :  { %16 = vsyncpa [#allocation4], 0  ;;  %s1788_s0 = inlined_call_operand.<no memory space> [shape: f32[1], index: 0, kind: input, shape index: {}]   ;;  %s1789_s1 = inlined_call_operand.vmem [shape: f32[8,32], index: 1, kind: input, shape index: {}]   ;;  %s1790_s2 = inlined_call_operand.vmem [shape: f32[8,4], index: 2, kind: input, shape index: {}]   ;;  %s1791_s3 = inlined_call_operand.vmem [shape: f32[1,4], index: 3, kind: input, shape index: {}]   ;;  %s1792_s4 = inlined_call_operand.hbm [shape: f32[32,128], index: 4, kind: input, shape index: {}]   ;;  %s1793_s5 = inlined_call_operand.vmem [shape: f32[1,128], index: 5, kind: input, shape index: {}]   ;;  %s1794_s6 = inlined_call_operand.hbm [shape: f32[128,128], index: 6, kind: input, shape index: {}]   ;;  %s1795_s7 = inlined_call_operand.vmem [shape: f32[1,128], index: 7, kind: input, shape index: {}]   ;;  %s1796_s8 = inlined_call_operand.hbm [shape: f32[128,128], index: 8, kind: input, shape index: {}]   ;;  %s1797_s9 = inlined_call_operand.vmem [shape: f32[1,128], index: 9, kind: input, shape index: {}]   ;;  %s1798_s10 = inlined_call_operand.hbm [shape: f32[2,8], index: 10, kind: output, shape index: {}]  }
   0x1   :  { %17 = vsyncpa [#allocation7], 0 }
   0x2   :  { %18 = vsyncpa [#allocation5], 0  ;;  %s1597_s13 = smov [#allocation6]   ;;  %s1598_s15 = smov [#allocation3]  }
   0x3   :  { %s46_s14 = sshll.u32 %s1597_s13, 4  ;;  %s32_s16 = sshll.u32 %s1598_s15, 4  ;;  %s47_s14 = int_to_ptr.vmem [resolvable:$true] %s46_s14  ;;  %s33_s16 = int_to_ptr.vmem [resolvable:$true] %s32_s16 }
   0x4   :  { %s1519_s17 = scalar_lea.vmem %s47_s14, 2048  ;;  %p1524_p1 = scmp.lt.s32.totalorder %s47_s14, %s47_s14 }
   0x5   :  { %p1520_p0 = scmp.ne.s32.totalorder %s47_s14, %s1519_s17  ;;  %p1525_p2 = scmp.lt.s32.totalorder %s1519_s17, %s1519_s17 }
   0x7   :  { %p1526_p3 = por %p1525_p2, %p1524_p1 }
   0x9   :  { %p1527_p4 = pnand %p1526_p3, %p1520_p0 }
   0xb   :  { %1530 = shalt.err (!%p1527_p4)
}
   0xc   :  { %s1599_s18 = smov 128   ;;  %s1600_s19 = smov 8  }
   0xd   :  { %52 = dma.hbm_to_vmem [thread:$0]  %s1794_s6, 2048, %s47_s14, [#allocation7], %s1599_s18, %s1599_s18, %s1600_s19  }
   0xe   :  { %s1539_s22 = scalar_lea.vmem %s33_s16, 512  ;;  %p1544_p6 = scmp.lt.s32.totalorder %s33_s16, %s33_s16 }
   0xf   :  { %p1540_p5 = scmp.ne.s32.totalorder %s33_s16, %s1539_s22  ;;  %p1545_p7 = scmp.lt.s32.totalorder %s1539_s22, %s1539_s22 }
  0x11   :  { %p1546_p8 = por %p1545_p7, %p1544_p6 }
  0x13   :  { %p1547_p9 = pnand %p1546_p8, %p1540_p5 }
  0x15   :  { %1550 = shalt.err (!%p1547_p9)
}
  0x16   :  { %38 = dma.hbm_to_vmem [thread:$0]  %s1792_s4, 512, %s33_s16, [#allocation4], %s1599_s18, %s1599_s18, %s1600_s19  }
  0x17   :  { %s1601_s25 = smov [#allocation8]  }
  0x18   :  { %s60_s26 = sshll.u32 %s1601_s25, 4  ;;  %s61_s26 = int_to_ptr.vmem [resolvable:$true] %s60_s26 }
  0x19   :  { %s1559_s27 = scalar_lea.vmem %s61_s26, 2048  ;;  %p1564_p11 = scmp.lt.s32.totalorder %s61_s26, %s61_s26 }
  0x1a   :  { %p1560_p10 = scmp.ne.s32.totalorder %s61_s26, %s1559_s27  ;;  %p1565_p12 = scmp.lt.s32.totalorder %s1559_s27, %s1559_s27 }
  0x1c   :  { %p1566_p13 = por %p1565_p12, %p1564_p11 }
  0x1e   :  { %p1567_p0 = pnand %p1566_p13, %p1560_p10 }
  0x20   :  { %1570 = shalt.err (!%p1567_p0)
}
  0x21   :  { %66 = dma.hbm_to_vmem [thread:$0]  %s1796_s8, 2048, %s61_s26, [#allocation7], %s1599_s18, %s1599_s18, %s1600_s19  }
  0x22   :  { %1591 = dma.done.wait [#allocation4], 512  }
  0x23   :  { %1592 = vsyncadd [#allocation4], 4294966784 }
  0x24   :  { %1593 = dma.done.wait [#allocation7], 4096  }
  0x25   :  { %1594 = vsyncadd [#allocation7], 4294963200  ;;  %v1602_v0 = vmov 0.0   ;;  %vm1603_vm0 = vmmov 0   ;;  %v82_v1 = vld [vmem:[#allocation3 + $0x18] sm:$0xff]  ;;  %v81_v2 = vld [vmem:[#allocation3 + $0x10] sm:$0xff]  ;;  %v814_v55 = vlaneseq }
  0x26   :  { %1355 = vmatprep.subr.mxu0 %v1602_v0  ;;  %1363 = vmatprep.mubr.msk.f32.mxu0 %vm1603_vm0, %v1602_v0  ;;  %v180_v3 = vld [vmem:[#allocation6 + $0x78] sm:$0xff]  ;;  %v80_v4 = vld [vmem:[#allocation3 + $0x8] sm:$0xff]  ;;  %v179_v5 = vld [vmem:[#allocation6 + $0x70] sm:$0xff]  ;;  %vm90_vm1 = vcmask 261120   ;;  %vm357_vm2 = vcmask 31744   ;;  %vm1265_vm4 = vcmask 57344  }
  0x27   :  { %1366 = vmatprep.subr.mxu1 %v1602_v0  ;;  %1398 = vmatprep.mubr.msk.f32.mxu1 %vm1603_vm0, %v1602_v0  ;;  %v178_v6 = vld [vmem:[#allocation6 + $0x68] sm:$0xff]  ;;  %v79_v7 = vld [vmem:[#allocation3] sm:$0xff]  ;;  %v176_v10 = vld [vmem:[#allocation6 + $0x58] sm:$0xff]  ;;  %v1734_v57 = vand.u32 127, %v814_v55 }
  0x28   :  { %1356 = vmatpush3.msra.mxu0 %v82_v1  ;;  %1367 = vmatpush3.msra.mxu1 %v180_v3  ;;  %v78_v8 = vld [vmem:[%s1789_s1] sm:$0xff]  ;;  %v175_v11 = vld [vmem:[#allocation6 + $0x50] sm:$0xff]  ;;  %v174_v12 = vld [vmem:[#allocation6 + $0x48] sm:$0xff] }
  0x29   :  { %1357 = vmatprep.subr.mxu0 %v1602_v0  ;;  %1368 = vmatprep.subr.mxu1 %v1602_v0  ;;  %v177_v9 = vld [vmem:[#allocation6 + $0x60] sm:$0xff]  ;;  %v172_v14 = vld [vmem:[#allocation6 + $0x38] sm:$0xff]  ;;  %v171_v15 = vld [vmem:[#allocation6 + $0x30] sm:$0xff]  ;;  %vm816_vm3 = vcmp.eq.s32.totalorder %v1734_v57, 4 }
  0x2a   :  { %1358 = vmatpush3.msra.mxu0 %v81_v2  ;;  %1369 = vmatpush3.msra.mxu1 %v179_v5  ;;  %v173_v13 = vld [vmem:[#allocation6 + $0x40] sm:$0xff]  ;;  %v170_v16 = vld [vmem:[#allocation6 + $0x28] sm:$0xff]  ;;  %v168_v18 = vld [vmem:[#allocation6 + $0x18] sm:$0xff]  ;;  %v1288_v62 = vsel %vm816_vm3, 1.0, %v1602_v0 }
  0x2b   :  { %1359 = vmatprep.subr.mxu0 %v1602_v0  ;;  %1370 = vmatprep.subr.mxu1 %v1602_v0  ;;  %v169_v17 = vld [vmem:[#allocation6 + $0x20] sm:$0xff]  ;;  %v167_v19 = vld [vmem:[#allocation6 + $0x10] sm:$0xff]  ;;  %v166_v20 = vld [vmem:[#allocation6 + $0x8] sm:$0xff]  ;;  %v886_v3 = vsub.f32 %v1288_v62, %v1288_v62 }
  0x2c   :  { %1360 = vmatpush3.msra.mxu0 %v80_v4  ;;  %1371 = vmatpush3.msra.mxu1 %v178_v6  ;;  %v165_v21 = vld [vmem:[#allocation6] sm:$0xff]  ;;  %v274_v22 = vld [vmem:[#allocation8 + $0x78] sm:$0xff]  ;;  %v273_v23 = vld [vmem:[#allocation8 + $0x70] sm:$0xff] }
  0x2d   :  { %1361 = vmatprep.subr.mxu0 %v1602_v0  ;;  %1372 = vmatprep.subr.mxu1 %v1602_v0  ;;  %v272_v24 = vld [vmem:[#allocation8 + $0x68] sm:$0xff]  ;;  %v271_v25 = vld [vmem:[#allocation8 + $0x60] sm:$0xff]  ;;  %v270_v26 = vld [vmem:[#allocation8 + $0x58] sm:$0xff] }
  0x2e   :  { %1362 = vmatpush3.msra.mxu0 %v79_v7  ;;  %1373 = vmatpush3.msra.mxu1 %v177_v9  ;;  %v269_v27 = vld [vmem:[#allocation8 + $0x50] sm:$0xff]  ;;  %v268_v28 = vld [vmem:[#allocation8 + $0x48] sm:$0xff]  ;;  %v1284_v29 = vld [vmem:[%s1793_s5] ss:$0 sm:$0xff]  ;;  %v887_v7 = vand.u32 4294901760, %v886_v3 }
  0x2f   :  { %1364 = vmatmul.mubr.msk.f32.vlgmr.msra.gmra.mxu0 %vm90_vm1, %v78_v8  ;;  %1374 = vmatprep.subr.mxu1 %v1602_v0  ;;  %v267_v34 = vld [vmem:[#allocation8 + $0x40] sm:$0xff]  ;;  %v266_v35 = vld [vmem:[#allocation8 + $0x38] sm:$0xff]  ;;  %v265_v36 = vld [vmem:[#allocation8 + $0x30] sm:$0xff] }
  0x30   :  { %1401 = vmatprep.subr.mxu0 %v1602_v0  ;;  %1375 = vmatpush3.msra.mxu1 %v176_v10  ;;  %v264_v37 = vld [vmem:[#allocation8 + $0x28] sm:$0xff]  ;;  %v263_v38 = vld [vmem:[#allocation8 + $0x20] sm:$0xff]  ;;  %v262_v39 = vld [vmem:[#allocation8 + $0x18] sm:$0xff] }
  0x31   :  { %1433 = vmatprep.mubr.msk.f32.mxu0 %vm1603_vm0, %v1602_v0  ;;  %1376 = vmatprep.subr.mxu1 %v1602_v0  ;;  %v261_v40 = vld [vmem:[#allocation8 + $0x10] sm:$0xff]  ;;  %v260_v41 = vld [vmem:[#allocation8 + $0x8] sm:$0xff]  ;;  %v259_v42 = vld [vmem:[#allocation8] sm:$0xff] }
  0x32   :  { %1377 = vmatpush3.msra.mxu1 %v175_v11  ;;  %1402 = vmatpush3.msra.mxu0 %v274_v22  ;;  %v1286_v43 = vld [vmem:[%s1795_s7] ss:$0 sm:$0xff]  ;;  %v888_v11 = vsub.f32 %v886_v3, %v887_v7 }
  0x33   :  { %1378 = vmatprep.subr.mxu1 %v1602_v0  ;;  %1403 = vmatprep.subr.mxu0 %v1602_v0  ;;  %v1287_v48 = vld [vmem:[%s1797_s9] ss:$0 sm:$0xff]  ;;  %s1605_s9 = smov [#allocation9]  }
  0x34   :  { %1379 = vmatpush3.msra.mxu1 %v174_v12  ;;  %1404 = vmatpush3.msra.mxu0 %v273_v23  ;;  %v356_v51 = vld [vmem:[%s1791_s3] sm:$0x1]  ;;  %s1274_s16 = sshll.u32 %s1605_s9, 4  ;;  %s1275_s16 = int_to_ptr.vmem [resolvable:$true] %s1274_s16 }
  0x35   :  { %1380 = vmatprep.subr.mxu1 %v1602_v0  ;;  %1405 = vmatprep.subr.mxu0 %v1602_v0  ;;  %v359_v53 = vsel %vm357_vm2, %v356_v51, 0  ;;  %v353_v58 = vld [vmem:[%s1790_s2] sm:$0xff]  ;;  %p1576_p2 = scmp.lt.s32.totalorder %s1275_s16, %s1275_s16 }
  0x36   :  { %1381 = vmatpush3.msra.mxu1 %v173_v13  ;;  %1406 = vmatpush3.msra.mxu0 %v272_v24  ;;  %v430_v54 = vand.u32 4294901760, %v359_v53 }
  0x37   :  { %1382 = vmatprep.subr.mxu1 %v1602_v0  ;;  %1407 = vmatprep.subr.mxu0 %v1602_v0 }
  0x38   :  { %1383 = vmatpush3.msra.mxu1 %v172_v14  ;;  %1408 = vmatpush3.msra.mxu0 %v271_v25  ;;  %v431_v56 = vsub.f32 %v359_v53, %v430_v54  ;;  %v889_v14 = vand.u32 4294901760, %v888_v11 }
  0x39   :  { %1384 = vmatprep.subr.mxu1 %v1602_v0  ;;  %1409 = vmatprep.subr.mxu0 %v1602_v0 }
  0x3a   :  { %1385 = vmatpush3.msra.mxu1 %v171_v15  ;;  %1410 = vmatpush3.msra.mxu0 %v270_v26  ;;  %v432_v59 = vand.u32 4294901760, %v431_v56 }
  0x3b   :  { %1386 = vmatprep.subr.mxu1 %v1602_v0  ;;  %1411 = vmatprep.subr.mxu0 %v1602_v0 }
  0x3c   :  { %1387 = vmatpush3.msra.mxu1 %v170_v16  ;;  %1412 = vmatpush3.msra.mxu0 %v269_v27  ;;  %v433_v1 = vsub.f32 %v431_v56, %v432_v59 }
  0x3d   :  { %1388 = vmatprep.subr.mxu1 %v1602_v0  ;;  %1413 = vmatprep.subr.mxu0 %v1602_v0 }
  0x3e   :  { %1389 = vmatpush3.msra.mxu1 %v169_v17  ;;  %1414 = vmatpush3.msra.mxu0 %v268_v28  ;;  %v434_v5 = vand.u32 4294901760, %v433_v1 }
  0x3f   :  { %1390 = vmatprep.subr.mxu1 %v1602_v0  ;;  %1415 = vmatprep.subr.mxu0 %v1602_v0 }
  0x40   :  { %1391 = vmatpush3.msra.mxu1 %v168_v18  ;;  %1416 = vmatpush3.msra.mxu0 %v267_v34  ;;  %v1604_v18 = vmov 1.0  }
  0x41   :  { %1392 = vmatprep.subr.mxu1 %v1602_v0  ;;  %1417 = vmatprep.subr.mxu0 %v1602_v0 }
  0x42   :  { %1393 = vmatpush3.msra.mxu1 %v167_v19  ;;  %1418 = vmatpush3.msra.mxu0 %v266_v35 }
  0x43   :  { %1394 = vmatprep.subr.mxu1 %v1602_v0  ;;  %1419 = vmatprep.subr.mxu0 %v1602_v0 }
  0x44   :  { %1395 = vmatpush3.msra.mxu1 %v166_v20  ;;  %1420 = vmatpush3.msra.mxu0 %v265_v36 }
  0x45   :  { %1396 = vmatprep.subr.mxu1 %v1602_v0  ;;  %1421 = vmatprep.subr.mxu0 %v1602_v0 }
  0x46   :  { %1397 = vmatpush3.msra.mxu1 %v165_v21  ;;  %1422 = vmatpush3.msra.mxu0 %v264_v37 }
  0x47   :  { %1436 = vmatprep.subr.mxu1 %v1602_v0  ;;  %1423 = vmatprep.subr.mxu0 %v1602_v0 }
  0x48   :  { %1424 = vmatpush3.msra.mxu0 %v263_v38  ;;  %v812_v38 = vstv %s1788_s0  ;;  %s1571_s0 = scalar_lea.vmem %s1275_s16, 32 }
  0x49   :  { %1425 = vmatprep.subr.mxu0 %v1602_v0  ;;  %p1572_p1 = scmp.ne.s32.totalorder %s1275_s16, %s1571_s0  ;;  %p1577_p3 = scmp.lt.s32.totalorder %s1571_s0, %s1571_s0 }
  0x4a   :  { %1426 = vmatpush3.msra.mxu0 %v262_v39 }
  0x4b   :  { %1427 = vmatprep.subr.mxu0 %v1602_v0  ;;  %p1578_p4 = por %p1577_p3, %p1576_p2 }
  0x4c   :  { %1428 = vmatpush3.msra.mxu0 %v261_v40 }
  0x4d   :  { %1429 = vmatprep.subr.mxu0 %v1602_v0  ;;  %p1579_p5 = pnand %p1578_p4, %p1572_p1 }
  0x4e   :  { %1430 = vmatpush3.msra.mxu0 %v260_v41 }
  0x4f   :  { %1431 = vmatprep.subr.mxu0 %v1602_v0 }
  0x50   :  { %1432 = vmatpush3.msra.mxu0 %v259_v42 }
  0x51   :  { %1446 = vmatprep.subr.mxu0 %v1602_v0 }
  0xef   :  { %v160_v30 = vpop.f32.mrf.mxu0 }
  0xf0   :  { %v161_v31 = vadd.f32 %v1284_v29, %v160_v30 }
  0xf1   :  { %v1365_v32 = vpop.f32.mrf.mxu0 }
  0xf2   :  { %1505 = vtanh.f32 %v161_v31 }
  0xff   :  { %v1506_v33 = vpop.eup %1505 }
 0x100   :  { %1399 = vmatmul.mubr.f32.vlgmr.msra.gmra.mxu1 %v1506_v33 }
 0x101   :  { %1438 = vmatprep.mubr.msk.f32.mxu1 %vm1603_vm0, %v1602_v0 }
 0x1c0   :  { %v254_v44 = vpop.f32.mrf.mxu1 }
 0x1c1   :  { %v255_v45 = vadd.f32 %v1286_v43, %v254_v44 }
 0x1c2   :  { %v1400_v46 = vpop.f32.mrf.mxu1 }
 0x1c3   :  { %1507 = vtanh.f32 %v255_v45 }
 0x1d0   :  { %v1508_v47 = vpop.eup %1507 }
 0x1d1   :  { %1434 = vmatmul.mubr.f32.vlgmr.msra.gmra.mxu0 %v1508_v47 }
 0x1d2   :  { %1448 = vmatprep.mubr.msk.f32.mxu0 %vm1603_vm0, %v1602_v0 }
 0x291   :  { %v348_v49 = vpop.f32.mrf.mxu0 }
 0x292   :  { %v349_v50 = vadd.f32 %v1287_v48, %v348_v49 }
 0x293   :  { %v1435_v52 = vpop.f32.mrf.mxu0 }
 0x294   :  { %1509 = vtanh.f32 %v349_v50  ;;  %v850_v8 = vand.u32 4294901760, %v349_v50 }
 0x296   :  { %v927_v12 = vsub.f32 %v349_v50, %v850_v8 }
 0x298   :  { %v928_v15 = vand.u32 4294901760, %v927_v12 }
 0x29a   :  { %v929_v16 = vsub.f32 %v927_v12, %v928_v15 }
 0x29c   :  { %v930_v17 = vand.u32 4294901760, %v929_v16 }
 0x2a1   :  { %v1510_v60 = vpop.eup %1509 }
 0x2a2   :  { %v354_v61 = vsub.f32 %v353_v58, %v1510_v60 }
 0x2a4   :  { %v355_v63 = vmul.f32 %v354_v61, %v354_v61 }
 0x2a6   :  { %v362_v2 = vsel %vm357_vm2, %v355_v63, 0 }
 0x2a7   :  { %v395_v4 = vand.u32 4294901760, %v362_v2 }
 0x2a9   :  { %1437 = vmatpush3.xpose.msra.mxu1 %v395_v4  ;;  %v472_v6 = vsub.f32 %v362_v2, %v395_v4 }
 0x2aa   :  { %1441 = vmatprep.subr.mxu1 %v1602_v0 }
 0x2ab   :  { %1447 = vmatpush3.xpose.msra.mxu0 %v472_v6  ;;  %v473_v9 = vand.u32 4294901760, %v472_v6 }
 0x2ac   :  { %1456 = vmatprep.subr.mxu0 %v1602_v0  ;;  %1439 = vmatmul.mubr.f32.vlgmr.msra.gmra.mxu1 %v434_v5 }
 0x2ad   :  { %v474_v10 = vsub.f32 %v472_v6, %v473_v9  ;;  %1443 = vmatprep.mubr.msk.f32.mxu1 %vm1603_vm0, %v1602_v0 }
 0x2ae   :  { %1449 = vmatmul.mubr.f32.vlgmr.msra.gmra.mxu0 %v431_v56 }
 0x2af   :  { %1457 = vmatpush3.xpose.msra.mxu0 %v473_v9  ;;  %v475_v13 = vand.u32 4294901760, %v474_v10  ;;  %1458 = vmatprep.mubr.msk.f32.mxu0 %vm1603_vm0, %v1602_v0 }
 0x2b0   :  { %1466 = vmatprep.subr.mxu0 %v1602_v0 }
 0x2b1   :  { %1442 = vmatpush3.xpose.msra.mxu1 %v475_v13 }
 0x2b2   :  { %1459 = vmatmul.mubr.f32.vlgmr.msra.gmra.mxu0 %v430_v54  ;;  %1451 = vmatprep.subr.mxu1 %v1602_v0 }
 0x2b3   :  { %1467 = vmatpush3.xpose.msra.mxu0 %v850_v8  ;;  %1468 = vmatprep.mubr.msk.f32.mxu0 %vm1603_vm0, %v1602_v0 }
 0x2b4   :  { %1444 = vmatmul.mubr.f32.vlgmr.msra.gmra.mxu1 %v430_v54  ;;  %1476 = vmatprep.subr.mxu0 %v1602_v0 }
 0x2b5   :  { %1452 = vmatpush3.xpose.msra.mxu1 %v395_v4  ;;  %1453 = vmatprep.mubr.msk.f32.mxu1 %vm1603_vm0, %v1602_v0 }
 0x2b6   :  { %1469 = vmatmul.mubr.f32.vlgmr.msra.gmra.mxu0 %v889_v14  ;;  %1461 = vmatprep.subr.mxu1 %v1602_v0 }
 0x2b7   :  { %1477 = vmatpush3.xpose.msra.mxu0 %v927_v12  ;;  %1478 = vmatprep.mubr.msk.f32.mxu0 %vm1603_vm0, %v1602_v0 }
 0x2b8   :  { %1454 = vmatmul.mubr.f32.vlgmr.msra.gmra.mxu1 %v432_v59  ;;  %1486 = vmatprep.subr.mxu0 %v1602_v0 }
 0x2b9   :  { %1462 = vmatpush3.xpose.msra.mxu1 %v395_v4  ;;  %1463 = vmatprep.mubr.msk.f32.mxu1 %vm1603_vm0, %v1602_v0 }
 0x2ba   :  { %1479 = vmatmul.mubr.f32.vlgmr.msra.gmra.mxu0 %v886_v3  ;;  %1471 = vmatprep.subr.mxu1 %v1602_v0 }
 0x2bb   :  { %1487 = vmatpush3.xpose.msra.mxu0 %v928_v15  ;;  %1488 = vmatprep.mubr.msk.f32.mxu0 %vm1603_vm0, %v1602_v0 }
 0x2bc   :  { %1464 = vmatmul.mubr.f32.vlgmr.msra.gmra.mxu1 %v430_v54 }
 0x2bd   :  { %1472 = vmatpush3.xpose.msra.mxu1 %v930_v17  ;;  %1473 = vmatprep.mubr.msk.f32.mxu1 %vm1603_vm0, %v1602_v0 }
 0x2be   :  { %1481 = vmatprep.subr.mxu1 %v1602_v0  ;;  %1489 = vmatmul.mubr.msk.f32.vlgmr.msra.gmra.mxu0 %vm816_vm3, %v1604_v18 }
 0x2c0   :  { %1474 = vmatmul.mubr.msk.f32.vlgmr.msra.gmra.mxu1 %vm816_vm3, %v1604_v18 }
 0x2c1   :  { %1482 = vmatpush3.xpose.msra.mxu1 %v850_v8  ;;  %1483 = vmatprep.mubr.msk.f32.mxu1 %vm1603_vm0, %v1602_v0 }
 0x2c2   :  { %1491 = vmatprep.subr.mxu1 %v1602_v0 }
 0x2c4   :  { %1484 = vmatmul.mubr.f32.vlgmr.msra.gmra.mxu1 %v887_v7 }
 0x2c5   :  { %1492 = vmatpush3.xpose.msra.mxu1 %v850_v8  ;;  %1493 = vmatprep.mubr.msk.f32.mxu1 %vm1603_vm0, %v1602_v0 }
 0x2c8   :  { %1494 = vmatmul.mubr.msk.f32.vlgmr.msra.gmra.mxu1 %vm816_vm3, %v1604_v18 }
 0x36c   :  { %v436_v19 = vpop.f32.mrf.mxu1 }
 0x36e   :  { %v1440_v20 = vpop.f32.mrf.mxu1  ;;  %v586_v21 = vpop.f32.mrf.mxu0 }
 0x370   :  { %v1450_v22 = vpop.f32.mrf.mxu0 }
 0x372   :  { %v734_v23 = vpop.f32.mrf.mxu0 }
 0x374   :  { %v512_v24 = vpop.f32.mrf.mxu1  ;;  %v1460_v25 = vpop.f32.mrf.mxu0 }
 0x375   :  { %v513_v26 = vadd.f32 %v512_v24, %v436_v19 }
 0x376   :  { %v1445_v27 = vpop.f32.mrf.mxu1  ;;  %v891_v28 = vpop.f32.mrf.mxu0 }
 0x377   :  { %v587_v29 = vadd.f32 %v586_v21, %v513_v26 }
 0x378   :  { %v660_v30 = vpop.f32.mrf.mxu1  ;;  %v1470_v31 = vpop.f32.mrf.mxu0 }
 0x379   :  { %v661_v32 = vadd.f32 %v660_v30, %v587_v29 }
 0x37a   :  { %v1455_v33 = vpop.f32.mrf.mxu1  ;;  %v1041_v34 = vpop.f32.mrf.mxu0 }
 0x37b   :  { %v735_v0 = vadd.f32 %v734_v23, %v661_v32 }
 0x37c   :  { %v806_v35 = vpop.f32.mrf.mxu1  ;;  %v1480_v36 = vpop.f32.mrf.mxu0 }
 0x37d   :  { %v807_v37 = vadd.f32 %v806_v35, %v735_v0 }
 0x37e   :  { %v1465_v39 = vpop.f32.mrf.mxu1  ;;  %v1189_v40 = vpop.f32.mrf.mxu0 }
 0x37f   :  { %v810_v41 = vmul.f32 -0.5, %v807_v37 }
 0x380   :  { %v967_v42 = vpop.f32.mrf.mxu1  ;;  %v1490_v43 = vpop.f32.mrf.mxu0 }
 0x381   :  { %v813_v44 = vadd.f32 %v812_v38, %v810_v41  ;;  %v968_v45 = vadd.f32 %v967_v42, %v891_v28 }
 0x382   :  { %v1475_v46 = vpop.f32.mrf.mxu1 }
 0x383   :  { %v1042_v47 = vadd.f32 %v1041_v34, %v968_v45  ;;  %1266 = vst.msk [vmem:[#allocation9] sm:$0x1] %vm1265_vm4, %v813_v44 }
 0x384   :  { %v1115_v48 = vpop.f32.mrf.mxu1 }
 0x385   :  { %v1116_v49 = vadd.f32 %v1115_v48, %v1042_v47 }
 0x386   :  { %v1485_v50 = vpop.f32.mrf.mxu1 }
 0x387   :  { %v1190_v51 = vadd.f32 %v1189_v40, %v1116_v49 }
 0x388   :  { %v1261_v52 = vpop.f32.mrf.mxu1 }
 0x389   :  { %v1262_v53 = vadd.f32 %v1261_v52, %v1190_v51 }
 0x38a   :  { %v1495_v54 = vpop.f32.mrf.mxu1 }
 0x38b   :  { %1267 = vst.msk [vmem:[#allocation9 + $0x1] sm:$0x1] %vm1265_vm4, %v1262_v53 }
 0x38c   :  { %1582 = shalt.err (!%p1579_p5)
}
 0x38d   :  { %1277 = dma.vmem_to_hbm [thread:$0]  %s1275_s16, 32, %s1798_s10, [#allocation5]  }
 0x38e   :  { %1595 = dma.done.wait [#allocation5], 32  }
 0x38f   :  { %1596 = vsyncadd [#allocation5], 4294967264 }
 0x390   :  { %1281 = vsyncpa [#allocation4], 1 }
 0x391   :  { %1282 = vsyncpa [#allocation7], 1 }
 0x392   :  { %1283 = vsyncpa [#allocation5], 1 }

</bundles_post_ra>
